<compile_context>
chip_gen: v7x
topology: tpu7x:2x2x1
jax: 0.10.0
libtpu: 0.0.40
codegen_flags: <defaults>
</compile_context>

<pallas_src>
import functools

import jax
import jax.numpy as jnp
from jax.experimental import pallas as pl
from jax.experimental.pallas import tpu as pltpu


def _label_smoothing_loss_kernel(logits_ref, target_ref, out_ref, acc_ref, *,
                                 smoothing, n_total, tile_n):
    i = pl.program_id(0)

    @pl.when(i == 0)
    def _init():
        acc_ref[...] = jnp.zeros_like(acc_ref)

    x = logits_ref[...].astype(jnp.float32)          # (tile_n, C)
    tgt = target_ref[...]                            # (tile_n, 1) int32

    tn, c = x.shape

    # Valid-row mask for the ragged last tile (rows >= n_total are padding).
    row = i * tile_n + jax.lax.broadcasted_iota(jnp.int32, (tn, 1), 0)
    valid = row < n_total                            # (tile_n, 1) bool

    # Zero padded rows so exp/log stay finite (garbage HBM padding otherwise).
    x = jnp.where(valid, x, jnp.float32(0.0))

    off = smoothing / (c - 1)
    on_minus_off = (1.0 - smoothing) - off

    # Numerically stable log-sum-exp along the class (lane) axis.
    m = jnp.max(x, axis=-1, keepdims=True)
    z = x - m                                        # (tile_n, C)
    lse = jnp.log(jnp.sum(jnp.exp(z), axis=-1, keepdims=True))   # (tile_n, 1)

    # Pieces of sum(t * z) without materializing t or the full log-softmax:
    #   sum(t * z) = off * sum(z) + (on - off) * z[label]
    col = jax.lax.broadcasted_iota(jnp.int32, (tn, c), 1)
    z_label = jnp.sum(jnp.where(col == tgt, z, jnp.float32(0.0)),
                      axis=-1, keepdims=True)        # (tile_n, 1)
    z_sum = jnp.sum(z, axis=-1, keepdims=True)       # (tile_n, 1)

    # per_row = -sum(t * (z - lse)) = lse - sum(t * z)   (since sum(t) == 1)
    per_row = lse - jnp.float32(off) * z_sum - jnp.float32(on_minus_off) * z_label
    per_row = jnp.where(valid, per_row, jnp.float32(0.0))

    acc_ref[...] += jnp.sum(per_row).reshape(1, 1)

    @pl.when(i == pl.num_programs(0) - 1)
    def _finalize():
        out_ref[...] = acc_ref[...] / jnp.float32(n_total)


def _choose_tile_n(n, c, itemsize):
    """Largest batch tile (multiple of 8) that keeps a logits block ~4 MiB."""
    target_block_bytes = 4 * 1024 * 1024
    tile = target_block_bytes // max(1, c * itemsize)
    tile = max(8, (tile // 8) * 8)
    n_pad = ((n + 7) // 8) * 8
    return int(min(tile, n_pad, 1024))


def label_smoothing_loss(logits, target, smoothing=0.0):
    """logits: (N, C) float, target: (N,) int -> scalar f32 mean loss."""
    assert 0.0 <= smoothing < 1.0
    n, c = logits.shape
    assert c >= 2, "LabelSmoothingLoss requires at least 2 classes (divides by C-1)."

    itemsize = jnp.dtype(logits.dtype).itemsize
    tile_n = _choose_tile_n(n, c, itemsize)
    num_tiles = pl.cdiv(n, tile_n)

    # Keep bf16/f16 logits in their narrow dtype on the DMA path (upcast in-kernel).
    target2d = target.astype(jnp.int32).reshape(n, 1)

    kernel = functools.partial(
        _label_smoothing_loss_kernel,
        smoothing=float(smoothing),
        n_total=int(n),
        tile_n=int(tile_n),
    )

    # Double-buffered input blocks (logits + targets) + scratch + headroom.
    block_bytes = tile_n * c * itemsize + tile_n * 4
    vmem_bytes = int(4 * block_bytes + (2 << 20))

    out = pl.pallas_call(
        kernel,
        out_shape=jax.ShapeDtypeStruct((1, 1), jnp.float32),
        grid_spec=pltpu.PrefetchScalarGridSpec(
            num_scalar_prefetch=0,
            grid=(num_tiles,),
            in_specs=[
                pl.BlockSpec((tile_n, c), lambda i: (i, 0)),
                pl.BlockSpec((tile_n, 1), lambda i: (i, 0)),
            ],
            out_specs=pl.BlockSpec((1, 1), lambda i: (0, 0)),
            scratch_shapes=[pltpu.VMEM((1, 1), jnp.float32)],
        ),
        compiler_params=pltpu.CompilerParams(
            dimension_semantics=("arbitrary",),   # accumulated output block
            vmem_limit_bytes=vmem_bytes,
        ),
    )(logits, target2d)
    return out[0, 0]


def _reference(logits, target, smoothing):
    n, c = logits.shape
    onehot = jax.nn.one_hot(target, c, dtype=jnp.float32)
    t = onehot * (1.0 - smoothing) + (1.0 - onehot) * (smoothing / (c - 1))
    lsm = jax.nn.log_softmax(logits.astype(jnp.float32), axis=-1)
    return jnp.mean(-jnp.sum(t * lsm, axis=-1))


if __name__ == "__main__":
    key = jax.random.PRNGKey(0)
    k1, k2, k3, k4 = jax.random.split(key, 4)
    smoothing = 0.1

    # Test 1: small aligned case (single tile).
    N, C = 8, 32
    logits = jax.random.normal(k1, (N, C), dtype=jnp.float32)
    target = jax.random.randint(k2, (N,), 0, C, dtype=jnp.int32)
    loss = label_smoothing_loss(logits, target, smoothing=smoothing)
    jax.block_until_ready(loss)
    ref = _reference(logits, target, smoothing)
    assert jnp.allclose(loss, ref, rtol=1e-5, atol=1e-5), (loss, ref)

    # Test 2: batch not a multiple of the tile (exercises multi-tile grid,
    # the running accumulator, and the ragged-last-tile mask).
    N2, C2 = 20, 32
    logits2 = jax.random.normal(k3, (N2, C2), dtype=jnp.float32)
    target2 = jax.random.randint(k4, (N2,), 0, C2, dtype=jnp.int32)
    loss2 = label_smoothing_loss(logits2, target2, smoothing=smoothing)
    jax.block_until_ready(loss2)
    ref2 = _reference(logits2, target2, smoothing)
    assert jnp.allclose(loss2, ref2, rtol=1e-5, atol=1e-5), (loss2, ref2)

    print("KERNEL_OK")
</pallas_src>

<mosaic_0001>
module attributes {stable_mosaic.version = 11 : i64} {
  func.func @_label_smoothing_loss_kernel(%arg0: i32, %arg1: memref<8x32xf32, #tpu.memory_space<vmem>>, %arg2: memref<8x1xi32, #tpu.memory_space<vmem>>, %arg3: memref<1x1xf32, #tpu.memory_space<vmem>>, %arg4: memref<1x1xf32, #tpu.memory_space<vmem>>) attributes {dimension_semantics = [#tpu.dimension_semantics<arbitrary>], iteration_bounds = array<i64: 1>, scalar_prefetch = 0 : i64, scratch_operands = 1 : i64, tpu.core_type = #tpu.core_type<tc>, window_params = [{transform_indices = @transform_0, window_bounds = array<i64: 8, 32>}, {transform_indices = @transform_1, window_bounds = array<i64: 8, 1>}, {pipeline_mode = #tpu.pipeline_mode<synchronous>, transform_indices = @transform_2, window_bounds = array<i64: 1, 1>}]} {
    %c0_i32 = arith.constant 0 : i32
    %0 = arith.cmpi eq, %arg0, %c0_i32 : i32
    %1 = arith.extui %0 : i1 to i32
    %c0_i32_0 = arith.constant 0 : i32
    %2 = arith.cmpi ne, %1, %c0_i32_0 : i32
    scf.if %2 {
      %cst_20 = arith.constant 0.000000e+00 : f32
      %51 = vector.broadcast %cst_20 : f32 to vector<1x1xf32>
      %c0_21 = arith.constant 0 : index
      %c0_22 = arith.constant 0 : index
      %52 = vector.load %arg4[%c0_21, %c0_22] : memref<1x1xf32, #tpu.memory_space<vmem>>, vector<1x1xf32>
      tpu.vector_store %arg4[%c0_21, %c0_22], %51 {strides = array<i32>} : memref<1x1xf32, #tpu.memory_space<vmem>>, vector<1x1xf32>,
    } else {
    }
    %c0 = arith.constant 0 : index
    %c0_1 = arith.constant 0 : index
    %3 = vector.load %arg1[%c0, %c0_1] : memref<8x32xf32, #tpu.memory_space<vmem>>, vector<8x32xf32>
    %c0_2 = arith.constant 0 : index
    %c0_3 = arith.constant 0 : index
    %4 = vector.load %arg2[%c0_2, %c0_3] : memref<8x1xi32, #tpu.memory_space<vmem>>, vector<8x1xi32>
    %c8_i32 = arith.constant 8 : i32
    %5 = arith.muli %arg0, %c8_i32 : i32
    %6 = tpu.iota {dimensions = array<i32: 0>} : vector<8x1xi32>
    %7 = vector.broadcast %5 : i32 to vector<8x1xi32>
    %8 = arith.addi %7, %6 : vector<8x1xi32>
    %c8_i32_4 = arith.constant 8 : i32
    %9 = vector.broadcast %c8_i32_4 : i32 to vector<8x1xi32>
    %10 = arith.cmpi slt, %8, %9 : vector<8x1xi32>
    %cst = arith.constant 0.000000e+00 : f32
    %11 = vector.shape_cast %10 : vector<8x1xi1> to vector<8x1xi1>
    %12 = vector.broadcast %11 : vector<8x1xi1> to vector<8x32xi1>
    %13 = vector.broadcast %cst : f32 to vector<8x32xf32>
    %14 = arith.select %12, %3, %13 : vector<8x32xi1>, vector<8x32xf32>
    %cst_5 = arith.constant dense<0xFF800000> : vector<8xf32>
    %15 = vector.multi_reduction <maximumf>, %14, %cst_5 [1] : vector<8x32xf32> to vector<8xf32>
    %16 = vector.shape_cast %15 : vector<8xf32> to vector<8x1xf32>
    %17 = vector.broadcast %16 : vector<8x1xf32> to vector<8x32xf32>
    %18 = arith.subf %14, %17 : vector<8x32xf32>
    %19 = math.exp %18 : vector<8x32xf32>
    %cst_6 = arith.constant dense<0.000000e+00> : vector<8xf32>
    %20 = vector.multi_reduction <add>, %19, %cst_6 [1] : vector<8x32xf32> to vector<8xf32>
    %21 = vector.shape_cast %20 : vector<8xf32> to vector<8x1xf32>
    %22 = math.log %21 : vector<8x1xf32>
    %23 = tpu.iota {dimensions = array<i32: 1>} : vector<8x32xi32>
    %24 = vector.broadcast %4 : vector<8x1xi32> to vector<8x32xi32>
    %25 = arith.cmpi eq, %23, %24 : vector<8x32xi32>
    %cst_7 = arith.constant 0.000000e+00 : f32
    %26 = vector.broadcast %cst_7 : f32 to vector<8x32xf32>
    %27 = arith.select %25, %18, %26 : vector<8x32xi1>, vector<8x32xf32>
    %cst_8 = arith.constant dense<0.000000e+00> : vector<8xf32>
    %28 = vector.multi_reduction <add>, %27, %cst_8 [1] : vector<8x32xf32> to vector<8xf32>
    %29 = vector.shape_cast %28 : vector<8xf32> to vector<8x1xf32>
    %cst_9 = arith.constant dense<0.000000e+00> : vector<8xf32>
    %30 = vector.multi_reduction <add>, %18, %cst_9 [1] : vector<8x32xf32> to vector<8xf32>
    %31 = vector.shape_cast %30 : vector<8xf32> to vector<8x1xf32>
    %cst_10 = arith.constant 0.0032258064 : f32
    %32 = vector.broadcast %cst_10 : f32 to vector<8x1xf32>
    %33 = arith.mulf %32, %31 : vector<8x1xf32>
    %34 = arith.subf %22, %33 : vector<8x1xf32>
    %cst_11 = arith.constant 0.896774172 : f32
    %35 = vector.broadcast %cst_11 : f32 to vector<8x1xf32>
    %36 = arith.mulf %35, %29 : vector<8x1xf32>
    %37 = arith.subf %34, %36 : vector<8x1xf32>
    %cst_12 = arith.constant 0.000000e+00 : f32
    %38 = vector.broadcast %cst_12 : f32 to vector<8x1xf32>
    %39 = arith.select %10, %37, %38 : vector<8x1xi1>, vector<8x1xf32>
    %c0_13 = arith.constant 0 : index
    %c0_14 = arith.constant 0 : index
    %40 = vector.load %arg4[%c0_13, %c0_14] : memref<1x1xf32, #tpu.memory_space<vmem>>, vector<1x1xf32>
    %41 = vector.shape_cast %39 : vector<8x1xf32> to vector<1x8x1xf32>
    %cst_15 = arith.constant dense<0.000000e+00> : vector<1xf32>
    %42 = vector.multi_reduction <add>, %41, %cst_15 [1, 2] : vector<1x8x1xf32> to vector<1xf32>
    %43 = vector.shape_cast %42 : vector<1xf32> to vector<1x1x1xf32>
    %44 = vector.extract %43[0, 0, 0] : f32 from vector<1x1x1xf32>
    %45 = vector.broadcast %44 : f32 to vector<1x1xf32>
    %46 = arith.addf %40, %45 : vector<1x1xf32>
    %c0_16 = arith.constant 0 : index
    %c0_17 = arith.constant 0 : index
    %47 = vector.load %arg4[%c0_16, %c0_17] : memref<1x1xf32, #tpu.memory_space<vmem>>, vector<1x1xf32>
    tpu.vector_store %arg4[%c0_16, %c0_17], %46 {strides = array<i32>} : memref<1x1xf32, #tpu.memory_space<vmem>>, vector<1x1xf32>,
    %c0_i32_18 = arith.constant 0 : i32
    %48 = arith.cmpi eq, %arg0, %c0_i32_18 : i32
    %49 = arith.extui %48 : i1 to i32
    %c0_i32_19 = arith.constant 0 : i32
    %50 = arith.cmpi ne, %49, %c0_i32_19 : i32
    scf.if %50 {
      %c0_20 = arith.constant 0 : index
      %c0_21 = arith.constant 0 : index
      %51 = vector.load %arg4[%c0_20, %c0_21] : memref<1x1xf32, #tpu.memory_space<vmem>>, vector<1x1xf32>
      %cst_22 = arith.constant 8.000000e+00 : f32
      %52 = vector.broadcast %cst_22 : f32 to vector<1x1xf32>
      %53 = arith.divf %51, %52 : vector<1x1xf32>
      %c0_23 = arith.constant 0 : index
      %c0_24 = arith.constant 0 : index
      %54 = vector.load %arg3[%c0_23, %c0_24] : memref<1x1xf32, #tpu.memory_space<vmem>>, vector<1x1xf32>
      tpu.vector_store %arg3[%c0_23, %c0_24], %53 {strides = array<i32>} : memref<1x1xf32, #tpu.memory_space<vmem>>, vector<1x1xf32>,
    } else {
    }
    return
  }
  func.func @transform_0(%arg0: i32) -> (i32, i32) {
    %c0_i32 = arith.constant 0 : i32
    %c0_i32_0 = arith.constant 0 : i32
    return %arg0, %c0_i32 : i32, i32
  }
  func.func @transform_1(%arg0: i32) -> (i32, i32) {
    %c0_i32 = arith.constant 0 : i32
    %c0_i32_0 = arith.constant 0 : i32
    return %arg0, %c0_i32 : i32, i32
  }
  func.func @transform_2(%arg0: i32) -> (i32, i32) {
    %c0_i32 = arith.constant 0 : i32
    %c0_i32_0 = arith.constant 0 : i32
    %c0_i32_1 = arith.constant 0 : i32
    return %c0_i32, %c0_i32_0 : i32, i32
  }
}

</mosaic_0001>

<bundles_post_ra>
// kernel: tpu_custom_call.1
= control target key start
LH: loop header
LB: loop body
LE: loop exit
PB: predicated region body
PF: predicated region fallthrough
CT: control target
= control target key end

     0   :  { %vm29_vm0 = vcmask 261120   ;;  %s173_s0 = inlined_call_operand.vmem [shape: f32[8,32], index: 0, kind: input, shape index: {}]   ;;  %s174_s1 = inlined_call_operand.vmem [shape: s32[8,1], index: 1, kind: input, shape index: {}]   ;;  %s175_s2 = inlined_call_operand.hbm [shape: f32[1,1], index: 2, kind: output, shape index: {}]  }
   0x1   :  { %v18_v0 = vld [vmem:[%s173_s0] sm:$0xff] }
   0x2   :  { %7 = vsyncpa [#allocation4], 0  ;;  %v30_v1 = vsel %vm29_vm0, %v18_v0, -inf  ;;  %v130_v2 = vmov 0   ;;  %v19_v3 = vld [vmem:[%s174_s1] sm:$0xff]  ;;  %v41_v7 = vlaneseq  ;;  %vm60_vm2 = vcmask 7168  }
   0x3   :  { %101 = vset.pattern.permute.xlu0 %v130_v2  ;;  %vm16_vm3 = vcmask 0   ;;  %v131_v25 = vmov 0.0   ;;  %s132_s1 = smov [#allocation3]  }
   0x4   :  { %31 = vmax.xlane.f32.xlu0 %v30_v1  ;;  %v42_v8 = vand.u32 127, %v41_v7  ;;  %17 = vst.msk [vmem:[#allocation2] sm:$0x1] %vm16_vm3, %v131_v25  ;;  %s88_s13 = sshll.u32 %s132_s1, 4  ;;  %s89_s13 = int_to_ptr.vmem [resolvable:$true] %s88_s13 }
   0x5   :  { %s106_s14 = scalar_lea.vmem %s89_s13, 16  ;;  %s110_s15 = scalar_lea.vmem %s89_s13, 32 }
   0x6   :  { %p107_p0 = scmp.ne.s32.totalorder %s89_s13, %s106_s14  ;;  %p111_p1 = scmp.lt.s32.totalorder %s89_s13, %s89_s13 }
   0x7   :  { %p112_p2 = scmp.lt.s32.totalorder %s110_s15, %s106_s14 }
   0x9   :  { %p113_p3 = por %p112_p2, %p111_p1 }
   0xb   :  { %v59_v33 = vld [vmem:[#allocation2] sm:$0x1]  ;;  %p114_p4 = pnand %p113_p3, %p107_p0 }
  0x1a   :  { %44 = vperm.xlu0 %101, %v19_v3  }
  0x91   :  { %v32_v4 = vpop.xlane.xlu0 %31 }
  0x92   :  { %v33_v5 = vsub.f32 %v18_v0, %v32_v4 }
  0x94   :  { %v34_v6 = vmul.f32 1.442695, %v33_v5  ;;  %v51_v12 = vsel %vm29_vm0, %v33_v5, 0.0 }
  0x96   :  { %102 = vpow2.f32 %v34_v6 }
  0x99   :  { %v45_v10 = vpop.permute.xlu0 %44 }
  0x9a   :  { %vm46_vm1 = vcmp.eq.s32.totalorder %v42_v8, %v45_v10 }
  0x9b   :  { %v47_v13 = vsel %vm46_vm1, %v33_v5, 0.0 }
  0x9c   :  { %v48_v14 = vsel %vm29_vm0, %v47_v13, 0.0 }
  0xa0   :  { %v103_v9 = vpop.eup %102 }
  0xa1   :  { %v36_v11 = vsel %vm29_vm0, %v103_v9, 0.0 }
  0xa2   :  { %37 = vadd.xlane.f32.xlu1 %v36_v11 }
  0xa6   :  { %52 = vadd.xlane.f32.xlu1 %v51_v12 }
  0xaa   :  { %49 = vadd.xlane.f32.xlu1 %v48_v14 }
 0x12f   :  { %v38_v15 = vpop.xlane.xlu1 %37 }
 0x130   :  { %104 = vlog2.f32 %v38_v15 }
 0x133   :  { %v53_v16 = vpop.xlane.xlu1 %52 }
 0x134   :  { %v54_v20 = vmul.f32 0.0032258064, %v53_v16 }
 0x137   :  { %v50_v18 = vpop.xlane.xlu1 %49 }
 0x138   :  { %v56_v22 = vmul.f32 0.8967742, %v50_v18 }
 0x13a   :  { %v105_v17 = vpop.eup %104 }
 0x13b   :  { %v40_v19 = vmul.f32 0.6931472, %v105_v17 }
 0x13d   :  { %v55_v21 = vsub.f32 %v40_v19, %v54_v20 }
 0x13f   :  { %v57_v23 = vsub.f32 %v55_v21, %v56_v22 }
 0x141   :  { %v61_v24 = vsel %vm60_vm2, %v57_v23, 0.0 }
 0x142   :  { %62 = vadd.xlane.f32.xlu1 %v61_v24 }
 0x1cf   :  { %v63_v26 = vpop.xlane.xlu1 %62 }
 0x1d0   :  { %v64_v27 = vrot.slane %v63_v26, 4 }
 0x1d2   :  { %v65_v28 = vadd.f32 %v64_v27, %v63_v26 }
 0x1d4   :  { %v66_v29 = vrot.slane %v65_v28, 2 }
 0x1d6   :  { %v67_v30 = vadd.f32 %v66_v29, %v65_v28 }
 0x1d8   :  { %v68_v31 = vrot.slane %v67_v30, 1 }
 0x1da   :  { %v69_v32 = vadd.f32 %v68_v31, %v67_v30 }
 0x1dc   :  { %96 = vpush %v69_v32 }
 0x20d   :  { %s97_s0 = spop %96 }
 0x20e   :  { %v71_v34 = vstv %s97_s0 }
 0x20f   :  { %v72_v35 = vadd.f32 %v71_v34, %v59_v33 }
 0x211   :  { %74 = vst.msk [vmem:[#allocation2] sm:$0x1] %vm16_vm3, %v72_v35 }
 0x218   :  { %v78_v36 = vld [vmem:[#allocation2] sm:$0x1] }
 0x219   :  { %v80_v37 = vmul.f32 0.125, %v78_v36 }
 0x21b   :  { %81 = vst.msk [vmem:[#allocation3] sm:$0x1] %vm16_vm3, %v80_v37 }
 0x21c   :  { %117 = shalt.err (!%p114_p4)
}
 0x21d   :  { %s118_s18 = scalar_lea.hbm %s175_s2, 16 }
 0x21e   :  { %p119_p5 = scmp.ne.s32.totalorder %s175_s2, %s118_s18  ;;  %p122_p6 = scmp.lt.u32.totalorder %s118_s18, %s175_s2 }
 0x220   :  { %p124_p7 = pnand %p122_p6, %p119_p5 }
 0x222   :  { %127 = shalt.err (!%p124_p7)
}
 0x223   :  { %91 = dma.vmem_to_hbm [thread:$0]  %s89_s13, 16, %s175_s2, [#allocation4]  }
 0x224   :  { %128 = dma.done.wait [#allocation4], 16  }
 0x225   :  { %129 = vsyncadd [#allocation4], 4294967280 }
 0x226   :  { %95 = vsyncpa [#allocation4], 1 }

</bundles_post_ra>
